<compile_context>
chip_gen: v6e
topology: v6e:2x2x1
jax: 0.10.0
libtpu: 0.0.40
codegen_flags: <defaults>
</compile_context>

<pallas_src>
import functools

import jax
import jax.numpy as jnp
from jax.experimental import pallas as pl
from jax.experimental.pallas import tpu as pltpu


def _link_predictor_kernel(x_ref, wk_ref, b1_ref, w2_ref, out_ref):
    # x_ref : (F, TE)   gathered+concatenated edge features, edges on lanes
    # wk_ref: (H, F)    fused weight  (= [w1a @ w_src | w1b @ w_dst])
    # b1_ref: (H, 1)    lin1 bias (f32)
    # w2_ref: (H, 1)    lin2 weight as a column (f32)
    # out_ref: (1, TE)  per-edge logits (f32), lane-dense
    z = jnp.dot(wk_ref[...], x_ref[...], preferred_element_type=jnp.float32)
    z = jnp.maximum(z + b1_ref[...], 0.0)                       # bias + ReLU (f32)
    # lin2 as VPU multiply + sublane reduction (keeps the MXU out of the
    # epilogue and yields a lane-dense (1, TE) result directly).
    out = jnp.sum(z * w2_ref[...], axis=0, keepdims=True)
    out_ref[...] = out.astype(out_ref.dtype)


@functools.partial(jax.jit, static_argnames=("edge_tile", "use_bf16"))
def link_predictor_forward(drug_emb, protein_emb, edge_index, params,
                           edge_tile=512, use_bf16=False):
    """Pallas implementation of LinkPredictor.forward."""
    w_src, w_dst, w1, b1, w2, b2 = (params["w_src"], params["w_dst"],
                                    params["w1"], params["b1"],
                                    params["w2"], params["b2"])
    hidden = w_src.shape[0]
    in_drug = w_src.shape[1]
    in_protein = w_dst.shape[1]
    feat = in_drug + in_protein

    assert edge_tile % 128 == 0, "edge_tile must be a multiple of 128 (lane dim)"

    src_idx = edge_index[0]
    dst_idx = edge_index[1]
    E = src_idx.shape[0]

    # --- index glue (stays in XLA): gather, concat, pad, transpose ----------
    xs = jnp.take(drug_emb, src_idx, axis=0)         # (E, in_drug)
    xd = jnp.take(protein_emb, dst_idx, axis=0)      # (E, in_protein)
    x_cat = jnp.concatenate([xs, xd], axis=1)        # (E, F)

    E_pad = ((E + edge_tile - 1) // edge_tile) * edge_tile
    if E_pad != E:
        x_cat = jnp.pad(x_cat, ((0, E_pad - E), (0, 0)))
    x_cat_t = x_cat.T                                # (F, E_pad)  edges on lanes

    # --- algebraic fusion of src_proj / dst_proj into lin1 ------------------
    #   h @ w1.T = xs @ (w_src.T @ w1a.T) + xd @ (w_dst.T @ w1b.T)
    #   transposed:  z.T = [w1a@w_src | w1b@w_dst] @ x_cat.T
    wk = jnp.concatenate([w1[:, :hidden] @ w_src,
                          w1[:, hidden:] @ w_dst], axis=1)   # (H, F)
    b1_col = b1.reshape(hidden, 1).astype(jnp.float32)       # (H, 1)
    w2_col = w2.reshape(hidden, 1).astype(jnp.float32)       # (H, 1)

    if use_bf16:
        # MXU operands only; bias/ReLU/reduction remain f32 (v5e-safe).
        x_cat_t = x_cat_t.astype(jnp.bfloat16)
        wk = wk.astype(jnp.bfloat16)

    n_tiles = E_pad // edge_tile
    grid = (n_tiles,)

    out2d = pl.pallas_call(
        _link_predictor_kernel,
        out_shape=jax.ShapeDtypeStruct((n_tiles, edge_tile), jnp.float32),
        grid_spec=pltpu.PrefetchScalarGridSpec(
            num_scalar_prefetch=0,
            grid=grid,
            in_specs=[
                pl.BlockSpec((feat, edge_tile), lambda i: (0, i)),   # features
                pl.BlockSpec((hidden, feat), lambda i: (0, 0)),      # fused W
                pl.BlockSpec((hidden, 1), lambda i: (0, 0)),         # b1
                pl.BlockSpec((hidden, 1), lambda i: (0, 0)),         # w2
            ],
            out_specs=pl.BlockSpec((1, edge_tile), lambda i: (i, 0)),
        ),
        compiler_params=pltpu.CompilerParams(
            dimension_semantics=("parallel",)),   # megacore / 2-TC sharding
    )(x_cat_t, wk, b1_col, w2_col)

    # b2 added outside the kernel (review: drop the (1,1) kernel input).
    return out2d.reshape(-1)[:E] + b2[0]             # (E,)  == x.view(-1)


def init_params(key, in_drug, in_protein, hidden_dim):
    """Deterministic init mimicking nn.Linear default (uniform ±1/sqrt(fan_in))."""
    ks = jax.random.split(key, 6)

    def lin_w(k, out_f, in_f):
        bound = 1.0 / jnp.sqrt(in_f)
        return jax.random.uniform(k, (out_f, in_f), jnp.float32, -bound, bound)

    def lin_b(k, out_f, in_f):
        bound = 1.0 / jnp.sqrt(in_f)
        return jax.random.uniform(k, (out_f,), jnp.float32, -bound, bound)

    return {
        "w_src": lin_w(ks[0], hidden_dim, in_drug),          # src_proj (no bias)
        "w_dst": lin_w(ks[1], hidden_dim, in_protein),       # dst_proj (no bias)
        "w1": lin_w(ks[2], hidden_dim, 2 * hidden_dim),      # lin1 weight
        "b1": lin_b(ks[3], hidden_dim, 2 * hidden_dim),      # lin1 bias
        "w2": lin_w(ks[4], 1, hidden_dim),                   # lin2 weight
        "b2": lin_b(ks[5], 1, hidden_dim),                   # lin2 bias
    }


def reference_forward(drug_emb, protein_emb, edge_index, params):
    """Pure-JAX reference mirroring the PyTorch module exactly."""
    src_idx, dst_idx = edge_index[0], edge_index[1]
    h_src = drug_emb[src_idx] @ params["w_src"].T
    h_dst = protein_emb[dst_idx] @ params["w_dst"].T
    h = jnp.concatenate([h_src, h_dst], axis=1)
    x = h @ params["w1"].T + params["b1"]
    x = jnp.maximum(x, 0.0)
    x = x @ params["w2"].T + params["b2"]
    return x.reshape(-1)


if __name__ == "__main__":
    key = jax.random.PRNGKey(0)
    k_param, k_drug, k_prot, k_src, k_dst = jax.random.split(key, 5)

    in_drug, in_protein, hidden_dim = 32, 24, 32
    n_drug, n_protein, n_edges = 10, 12, 16

    params = init_params(k_param, in_drug, in_protein, hidden_dim)
    drug_emb = jax.random.normal(k_drug, (n_drug, in_drug), jnp.float32)
    protein_emb = jax.random.normal(k_prot, (n_protein, in_protein), jnp.float32)
    edge_index = jnp.stack([
        jax.random.randint(k_src, (n_edges,), 0, n_drug, jnp.int32),
        jax.random.randint(k_dst, (n_edges,), 0, n_protein, jnp.int32),
    ], axis=0)

    ref = reference_forward(drug_emb, protein_emb, edge_index, params)

    # f32 path: strict check against the PyTorch-equivalent reference.
    out = link_predictor_forward(drug_emb, protein_emb, edge_index, params,
                                 edge_tile=512, use_bf16=False)
    out = jax.block_until_ready(out)
    assert out.shape == (n_edges,), out.shape
    assert jnp.allclose(out, ref, atol=1e-4, rtol=1e-4), (out, ref)

    # bf16 MXU-operand path (v6e/v7x traffic reduction): looser tolerance.
    out_bf16 = link_predictor_forward(drug_emb, protein_emb, edge_index, params,
                                      edge_tile=512, use_bf16=True)
    out_bf16 = jax.block_until_ready(out_bf16)
    assert out_bf16.shape == (n_edges,), out_bf16.shape
    assert jnp.allclose(out_bf16, ref, atol=1e-1, rtol=1e-1), (out_bf16, ref)

    print("KERNEL_OK")
</pallas_src>

<mosaic_0001>
module attributes {stable_mosaic.version = 11 : i64} {
  func.func @_link_predictor_kernel(%arg0: i32, %arg1: memref<56x512xf32, #tpu.memory_space<vmem>>, %arg2: memref<32x56xf32, #tpu.memory_space<vmem>>, %arg3: memref<32x1xf32, #tpu.memory_space<vmem>>, %arg4: memref<32x1xf32, #tpu.memory_space<vmem>>, %arg5: memref<1x512xf32, #tpu.memory_space<vmem>>) attributes {dimension_semantics = [#tpu.dimension_semantics<parallel>], iteration_bounds = array<i64: 1>, scalar_prefetch = 0 : i64, scratch_operands = 0 : i64, tpu.core_type = #tpu.core_type<tc>, window_params = [{transform_indices = @transform_0, window_bounds = array<i64: 56, 512>}, {pipeline_mode = #tpu.pipeline_mode<synchronous>, transform_indices = @transform_1, window_bounds = array<i64: 32, 56>}, {pipeline_mode = #tpu.pipeline_mode<synchronous>, transform_indices = @transform_2, window_bounds = array<i64: 32, 1>}, {pipeline_mode = #tpu.pipeline_mode<synchronous>, transform_indices = @transform_3, window_bounds = array<i64: 32, 1>}, {transform_indices = @transform_4, window_bounds = array<i64: 1, 512>}]} {
    %c0 = arith.constant 0 : index
    %c0_0 = arith.constant 0 : index
    %0 = vector.load %arg2[%c0, %c0_0] : memref<32x56xf32, #tpu.memory_space<vmem>>, vector<32x56xf32>
    %c0_1 = arith.constant 0 : index
    %c0_2 = arith.constant 0 : index
    %1 = vector.load %arg1[%c0_1, %c0_2] : memref<56x512xf32, #tpu.memory_space<vmem>>, vector<56x512xf32>
    %cst = arith.constant dense<0.000000e+00> : vector<32x512xf32>
    %2 = tpu.matmul %0, %1, %cst {dimension_numbers = #tpu.dot_dimension_numbers<[1], [0], [0], [1], [0, 0, 1, 1], [], []>} : vector<32x56xf32>, vector<56x512xf32>, vector<32x512xf32> -> vector<32x512xf32>
    %c0_3 = arith.constant 0 : index
    %c0_4 = arith.constant 0 : index
    %3 = vector.load %arg3[%c0_3, %c0_4] : memref<32x1xf32, #tpu.memory_space<vmem>>, vector<32x1xf32>
    %4 = vector.broadcast %3 : vector<32x1xf32> to vector<32x512xf32>
    %5 = arith.addf %2, %4 : vector<32x512xf32>
    %cst_5 = arith.constant 0.000000e+00 : f32
    %6 = vector.broadcast %cst_5 : f32 to vector<32x512xf32>
    %7 = arith.maximumf %5, %6 : vector<32x512xf32>
    %c0_6 = arith.constant 0 : index
    %c0_7 = arith.constant 0 : index
    %8 = vector.load %arg4[%c0_6, %c0_7] : memref<32x1xf32, #tpu.memory_space<vmem>>, vector<32x1xf32>
    %9 = vector.broadcast %8 : vector<32x1xf32> to vector<32x512xf32>
    %10 = arith.mulf %7, %9 : vector<32x512xf32>
    %cst_8 = arith.constant dense<0.000000e+00> : vector<512xf32>
    %11 = vector.multi_reduction <add>, %10, %cst_8 [0] : vector<32x512xf32> to vector<512xf32>
    %12 = vector.shape_cast %11 : vector<512xf32> to vector<1x512xf32>
    %c0_9 = arith.constant 0 : index
    %c0_10 = arith.constant 0 : index
    %13 = vector.load %arg5[%c0_9, %c0_10] : memref<1x512xf32, #tpu.memory_space<vmem>>, vector<1x512xf32>
    tpu.vector_store %arg5[%c0_9, %c0_10], %12 {strides = array<i32>} : memref<1x512xf32, #tpu.memory_space<vmem>>, vector<1x512xf32>,
    return
  }
  func.func @transform_0(%arg0: i32) -> (i32, i32) {
    %c0_i32 = arith.constant 0 : i32
    %c0_i32_0 = arith.constant 0 : i32
    return %c0_i32, %arg0 : i32, i32
  }
  func.func @transform_1(%arg0: i32) -> (i32, i32) {
    %c0_i32 = arith.constant 0 : i32
    %c0_i32_0 = arith.constant 0 : i32
    %c0_i32_1 = arith.constant 0 : i32
    return %c0_i32, %c0_i32_0 : i32, i32
  }
  func.func @transform_2(%arg0: i32) -> (i32, i32) {
    %c0_i32 = arith.constant 0 : i32
    %c0_i32_0 = arith.constant 0 : i32
    %c0_i32_1 = arith.constant 0 : i32
    return %c0_i32, %c0_i32_0 : i32, i32
  }
  func.func @transform_3(%arg0: i32) -> (i32, i32) {
    %c0_i32 = arith.constant 0 : i32
    %c0_i32_0 = arith.constant 0 : i32
    %c0_i32_1 = arith.constant 0 : i32
    return %c0_i32, %c0_i32_0 : i32, i32
  }
  func.func @transform_4(%arg0: i32) -> (i32, i32) {
    %c0_i32 = arith.constant 0 : i32
    %c0_i32_0 = arith.constant 0 : i32
    return %arg0, %c0_i32 : i32, i32
  }
}

</mosaic_0001>

<bundles_post_ra>
// kernel: link_predictor_forward.1
= control target key start
LH: loop header
LB: loop body
LE: loop exit
PB: predicated region body
PF: predicated region fallthrough
CT: control target
= control target key end

     0   :  { %v407_v3 = vmov 0.0   ;;  %vm73_vm0 = vcmask 457728   ;;  %v408_v33 = vmov 0   ;;  %s574_s0 = inlined_call_operand.vmem [shape: f32[56,512], index: 0, kind: input, shape index: {}]   ;;  %s575_s1 = inlined_call_operand.vmem [shape: f32[32,56], index: 1, kind: input, shape index: {}]   ;;  %s576_s2 = inlined_call_operand.vmem [shape: f32[32,1], index: 2, kind: input, shape index: {}]   ;;  %s577_s3 = inlined_call_operand.vmem [shape: f32[32,1], index: 3, kind: input, shape index: {}]   ;;  %s578_s4 = inlined_call_operand.vmem [shape: f32[1,512], index: 4, kind: output, shape index: {}]  }
   0x1   :  { %v46_v0 = vld [vmem:[%s574_s0 + $0xc8] sm:$0xff]  ;;  %v48_v1 = vld [vmem:[%s574_s0 + $0xd8] sm:$0xff]  ;;  %v45_v2 = vld [vmem:[%s574_s0 + $0xc0] sm:$0xff]  ;;  %150 = vmatprep.mubr.f32.mxu0 %v407_v3  ;;  %239 = vmatprep.mubr.f32.mxu1 %v407_v3 }
   0x2   :  { %104 = vmatprep.subr.mxu0 %v46_v0  ;;  %193 = vmatprep.subr.mxu1 %v48_v1  ;;  %v47_v4 = vld [vmem:[%s574_s0 + $0xd0] sm:$0xff]  ;;  %v42_v5 = vld [vmem:[%s574_s0 + $0xa8] sm:$0xff]  ;;  %v44_v6 = vld [vmem:[%s574_s0 + $0xb8] sm:$0xff] }
   0x3   :  { %105 = vmatpush1.msra.mxu0 %v45_v2  ;;  %194 = vmatpush1.msra.mxu1 %v47_v4  ;;  %v41_v7 = vld [vmem:[%s574_s0 + $0xa0] sm:$0xff]  ;;  %v43_v8 = vld [vmem:[%s574_s0 + $0xb0] sm:$0xff]  ;;  %v38_v9 = vld [vmem:[%s574_s0 + $0x88] sm:$0xff] }
   0x4   :  { %106 = vmatprep.subr.mxu0 %v42_v5  ;;  %195 = vmatprep.subr.mxu1 %v44_v6  ;;  %v40_v10 = vld [vmem:[%s574_s0 + $0x98] sm:$0xff]  ;;  %v37_v11 = vld [vmem:[%s574_s0 + $0x80] sm:$0xff]  ;;  %v39_v12 = vld [vmem:[%s574_s0 + $0x90] sm:$0xff] }
   0x5   :  { %107 = vmatpush1.msra.mxu0 %v41_v7  ;;  %196 = vmatpush1.msra.mxu1 %v43_v8  ;;  %v34_v13 = vld [vmem:[%s574_s0 + $0x68] sm:$0xff]  ;;  %v36_v14 = vld [vmem:[%s574_s0 + $0x78] sm:$0xff]  ;;  %v33_v15 = vld [vmem:[%s574_s0 + $0x60] sm:$0xff] }
   0x6   :  { %108 = vmatprep.subr.mxu0 %v38_v9  ;;  %197 = vmatprep.subr.mxu1 %v40_v10  ;;  %v35_v16 = vld [vmem:[%s574_s0 + $0x70] sm:$0xff]  ;;  %v30_v17 = vld [vmem:[%s574_s0 + $0x48] sm:$0xff]  ;;  %v32_v18 = vld [vmem:[%s574_s0 + $0x58] sm:$0xff] }
   0x7   :  { %109 = vmatpush1.msra.mxu0 %v37_v11  ;;  %198 = vmatpush1.msra.mxu1 %v39_v12  ;;  %v29_v19 = vld [vmem:[%s574_s0 + $0x40] sm:$0xff]  ;;  %v31_v20 = vld [vmem:[%s574_s0 + $0x50] sm:$0xff]  ;;  %v26_v21 = vld [vmem:[%s574_s0 + $0x28] sm:$0xff] }
   0x8   :  { %110 = vmatprep.subr.mxu0 %v34_v13  ;;  %199 = vmatprep.subr.mxu1 %v36_v14  ;;  %v28_v22 = vld [vmem:[%s574_s0 + $0x38] sm:$0xff]  ;;  %v25_v23 = vld [vmem:[%s574_s0 + $0x20] sm:$0xff]  ;;  %v27_v24 = vld [vmem:[%s574_s0 + $0x30] sm:$0xff] }
   0x9   :  { %111 = vmatpush1.msra.mxu0 %v33_v15  ;;  %200 = vmatpush1.msra.mxu1 %v35_v16  ;;  %v22_v25 = vld [vmem:[%s574_s0 + $0x8] sm:$0xff]  ;;  %v24_v26 = vld [vmem:[%s574_s0 + $0x18] sm:$0xff]  ;;  %v21_v27 = vld [vmem:[%s574_s0] sm:$0xff] }
   0xa   :  { %112 = vmatprep.subr.mxu0 %v30_v17  ;;  %201 = vmatprep.subr.mxu1 %v32_v18  ;;  %v23_v28 = vld [vmem:[%s574_s0 + $0x10] sm:$0xff]  ;;  %v17_v29 = vld [vmem:[%s575_s1] sm:$0xff]  ;;  %v18_v32 = vld [vmem:[%s575_s1 + $0x8] sm:$0xff] }
   0xb   :  { %113 = vmatpush1.msra.mxu0 %v29_v19  ;;  %202 = vmatpush1.msra.mxu1 %v31_v20  ;;  %v49_v30 = vld [vmem:[%s576_s2] sm:$0xff]  ;;  %v51_v31 = vld [vmem:[%s576_s2 + $0x10] sm:$0xff]  ;;  %v50_v34 = vld [vmem:[%s576_s2 + $0x8] sm:$0xff] }
   0xc   :  { %114 = vmatprep.subr.mxu0 %v26_v21  ;;  %203 = vmatprep.subr.mxu1 %v28_v22  ;;  %v52_v35 = vld [vmem:[%s576_s2 + $0x18] sm:$0xff]  ;;  %v19_v36 = vld [vmem:[%s575_s1 + $0x10] sm:$0xff]  ;;  %v280_v37 = vld [vmem:[%s577_s3] sm:$0xff] }
   0xd   :  { %115 = vmatpush1.msra.mxu0 %v25_v23  ;;  %204 = vmatpush1.msra.mxu1 %v27_v24  ;;  %v281_v38 = vld [vmem:[%s577_s3 + $0x8] sm:$0xff]  ;;  %v20_v39 = vld [vmem:[%s575_s1 + $0x18] sm:$0xff]  ;;  %v282_v40 = vld [vmem:[%s577_s3 + $0x10] sm:$0xff] }
   0xe   :  { %116 = vmatprep.subr.mxu0 %v22_v25  ;;  %205 = vmatprep.subr.mxu1 %v24_v26  ;;  %v283_v41 = vld [vmem:[%s577_s3 + $0x18] sm:$0xff] }
   0xf   :  { %117 = vmatpush1.msra.mxu0 %v21_v27  ;;  %206 = vmatpush1.msra.mxu1 %v23_v28 }
  0x10   :  { %394 = vmatmul.mubr.msk.f32.vlgmr.msra.gmra.mxu0 %vm73_vm0, %v17_v29  ;;  %398 = vmatmul.mubr.msk.f32.vlgmr.msra.gmra.mxu1 %vm73_vm0, %v17_v29 }
  0x11   :  { %156 = vmatprep.mubr.f32.mxu0 %v407_v3  ;;  %245 = vmatprep.mubr.f32.mxu1 %v407_v3 }
  0x12   :  { %405 = vset.pattern.permute.xlu0 %v408_v33  ;;  %406 = vset.pattern.permute.xlu1 %v408_v33 }
  0x13   :  { %55 = vperm.xlu0 %405, %v49_v30   ;;  %65 = vperm.xlu1 %406, %v51_v31  }
  0x14   :  { %395 = vmatmul.mubr.msk.f32.gmra.mxu0 %vm73_vm0, %v18_v32  ;;  %399 = vmatmul.mubr.msk.f32.gmra.mxu1 %vm73_vm0, %v18_v32 }
  0x15   :  { %162 = vmatprep.mubr.f32.mxu0 %v407_v3  ;;  %251 = vmatprep.mubr.f32.mxu1 %v407_v3 }
  0x17   :  { %60 = vperm.xlu0 %405, %v50_v34   ;;  %70 = vperm.xlu1 %406, %v52_v35  }
  0x18   :  { %396 = vmatmul.mubr.msk.f32.gmra.mxu0 %vm73_vm0, %v19_v36  ;;  %400 = vmatmul.mubr.msk.f32.gmra.mxu1 %vm73_vm0, %v19_v36 }
  0x19   :  { %168 = vmatprep.mubr.f32.mxu0 %v407_v3  ;;  %257 = vmatprep.mubr.f32.mxu1 %v407_v3 }
  0x1b   :  { %286 = vperm.xlu0 %405, %v280_v37   ;;  %291 = vperm.xlu1 %406, %v281_v38  }
  0x1c   :  { %397 = vmatmul.mubr.msk.f32.gmra.mxu0 %vm73_vm0, %v20_v39  ;;  %401 = vmatmul.mubr.msk.f32.gmra.mxu1 %vm73_vm0, %v20_v39 }
  0x1f   :  { %296 = vperm.xlu0 %405, %v282_v40   ;;  %301 = vperm.xlu1 %406, %v283_v41  }
  0x8e   :  { %v56_v42 = vpop.permute.xlu0 %55  ;;  %v66_v43 = vpop.permute.xlu1 %65 }
  0x92   :  { %v61_v44 = vpop.permute.xlu0 %60  ;;  %v71_v51 = vpop.permute.xlu1 %70 }
  0x96   :  { %v287_v56 = vpop.permute.xlu0 %286  ;;  %v292_v7 = vpop.permute.xlu1 %291 }
  0x9a   :  { %v297_v16 = vpop.permute.xlu0 %296 }
  0xd0   :  { %v152_v45 = vpop.f32.mrf.mxu0  ;;  %v241_v46 = vpop.f32.mrf.mxu1 }
  0xd1   :  { %v153_v47 = vadd.f32 %v152_v45, %v56_v42  ;;  %v242_v48 = vadd.f32 %v241_v46, %v56_v42  ;;  %v302_v45 = vpop.permute.xlu1 %301 }
  0xd2   :  { %v154_v49 = vpop.f32.mrf.mxu0  ;;  %v243_v50 = vpop.f32.mrf.mxu1 }
  0xd3   :  { %v155_v52 = vadd.f32 %v154_v49, %v56_v42  ;;  %v244_v53 = vadd.f32 %v243_v50, %v56_v42  ;;  %v264_v57 = vmax.f32 %v153_v47, 0.0  ;;  %v266_v58 = vmax.f32 %v242_v48, 0.0 }
  0xd4   :  { %v158_v54 = vpop.f32.mrf.mxu0  ;;  %v247_v55 = vpop.f32.mrf.mxu1 }
  0xd5   :  { %v159_v59 = vadd.f32 %v158_v54, %v61_v44  ;;  %v248_v60 = vadd.f32 %v247_v55, %v61_v44  ;;  %v265_v1 = vmax.f32 %v155_v52, 0.0  ;;  %v267_v2 = vmax.f32 %v244_v53, 0.0 }
  0xd6   :  { %v160_v61 = vpop.f32.mrf.mxu0  ;;  %v249_v62 = vpop.f32.mrf.mxu1  ;;  %v304_v12 = vmul.f32 %v287_v56, %v264_v57  ;;  %v306_v13 = vmul.f32 %v287_v56, %v266_v58 }
  0xd7   :  { %v161_v63 = vadd.f32 %v160_v61, %v61_v44  ;;  %v250_v0 = vadd.f32 %v249_v62, %v61_v44  ;;  %v268_v3 = vmax.f32 %v159_v59, 0.0  ;;  %v270_v4 = vmax.f32 %v248_v60, 0.0 }
  0xd8   :  { %v164_v5 = vpop.f32.mrf.mxu0  ;;  %v253_v6 = vpop.f32.mrf.mxu1  ;;  %v305_v21 = vmul.f32 %v287_v56, %v265_v1  ;;  %v307_v22 = vmul.f32 %v287_v56, %v267_v2 }
  0xd9   :  { %v269_v8 = vmax.f32 %v161_v63, 0.0  ;;  %v271_v9 = vmax.f32 %v250_v0, 0.0  ;;  %v165_v10 = vadd.f32 %v164_v5, %v66_v43  ;;  %v254_v11 = vadd.f32 %v253_v6, %v66_v43 }
  0xda   :  { %v166_v14 = vpop.f32.mrf.mxu0  ;;  %v255_v15 = vpop.f32.mrf.mxu1  ;;  %v308_v17 = vmul.f32 %v292_v7, %v268_v3  ;;  %v310_v18 = vmul.f32 %v292_v7, %v270_v4  ;;  %v409_v4 = vmov 1966171168   ;;  %v365_v6 = vlaneseq }
  0xdb   :  { %v272_v19 = vmax.f32 %v165_v10, 0.0  ;;  %v274_v20 = vmax.f32 %v254_v11, 0.0  ;;  %v167_v23 = vadd.f32 %v166_v14, %v66_v43  ;;  %v256_v24 = vadd.f32 %v255_v15, %v66_v43 }
  0xdc   :  { %v170_v25 = vpop.f32.mrf.mxu0  ;;  %v259_v26 = vpop.f32.mrf.mxu1  ;;  %v309_v27 = vmul.f32 %v292_v7, %v269_v8  ;;  %v311_v28 = vmul.f32 %v292_v7, %v271_v9  ;;  %v320_v37 = vadd.f32 %v308_v17, %v304_v12  ;;  %v338_v38 = vadd.f32 %v310_v18, %v306_v13 }
  0xdd   :  { %v312_v29 = vmul.f32 %v297_v16, %v272_v19  ;;  %v314_v30 = vmul.f32 %v297_v16, %v274_v20  ;;  %v273_v31 = vmax.f32 %v167_v23, 0.0  ;;  %v275_v32 = vmax.f32 %v256_v24, 0.0 }
  0xde   :  { %v171_v33 = vadd.f32 %v170_v25, %v71_v51  ;;  %v260_v34 = vadd.f32 %v259_v26, %v71_v51  ;;  %v172_v35 = vpop.f32.mrf.mxu0  ;;  %v261_v36 = vpop.f32.mrf.mxu1  ;;  %v329_v46 = vadd.f32 %v309_v27, %v305_v21  ;;  %v347_v47 = vadd.f32 %v311_v28, %v307_v22 }
  0xdf   :  { %v173_v39 = vadd.f32 %v172_v35, %v71_v51  ;;  %v262_v40 = vadd.f32 %v261_v36, %v71_v51  ;;  %v313_v41 = vmul.f32 %v297_v16, %v273_v31  ;;  %v315_v42 = vmul.f32 %v297_v16, %v275_v32 }
  0xe0   :  { %v276_v44 = vmax.f32 %v171_v33, 0.0  ;;  %v278_v43 = vmax.f32 %v260_v34, 0.0  ;;  %v321_v50 = vadd.f32 %v320_v37, %v312_v29  ;;  %v339_v52 = vadd.f32 %v338_v38, %v314_v30 }
  0xe1   :  { %v277_v48 = vmax.f32 %v173_v39, 0.0  ;;  %v279_v49 = vmax.f32 %v262_v40, 0.0  ;;  %v330_v55 = vadd.f32 %v329_v46, %v313_v41  ;;  %v348_v56 = vadd.f32 %v347_v47, %v315_v42 }
  0xe2   :  { %v316_v53 = vmul.f32 %v302_v45, %v276_v44  ;;  %v318_v54 = vmul.f32 %v302_v45, %v278_v43  ;;  %v363_v5 = vunpack.c.l.s4 %v409_v4  ;;  %v366_v16 = vshrl.u32 %v365_v6, 7 }
  0xe3   :  { %v317_v57 = vmul.f32 %v302_v45, %v277_v48  ;;  %v319_v58 = vmul.f32 %v302_v45, %v279_v49  ;;  %vm387_vm1 = vcmp.lt.s32.totalorder %v365_v6, 512 }
  0xe4   :  { %v322_v59 = vadd.f32 %v321_v50, %v316_v53  ;;  %v340_v60 = vadd.f32 %v339_v52, %v318_v54  ;;  %v364_v15 = vunpack.c.0.s8 %v363_v5 }
  0xe5   :  { %v331_v51 = vadd.f32 %v330_v55, %v317_v57  ;;  %v349_v61 = vadd.f32 %v348_v56, %v319_v58 }
  0xe6   :  { %v323_v62 = vrot.slane %v322_v59, 4  ;;  %v341_v63 = vrot.slane %v340_v60, 4  ;;  %v367_v23 = vsub.s32 %v364_v15, %v366_v16 }
  0xe7   :  { %v332_v0 = vrot.slane %v331_v51, 4  ;;  %v350_v1 = vrot.slane %v349_v61, 4 }
  0xe8   :  { %v324_v2 = vadd.f32 %v323_v62, %v322_v59  ;;  %v342_v3 = vadd.f32 %v341_v63, %v340_v60 }
  0xe9   :  { %v333_v7 = vadd.f32 %v332_v0, %v331_v51  ;;  %v351_v8 = vadd.f32 %v350_v1, %v349_v61 }
  0xea   :  { %v325_v9 = vrot.slane %v324_v2, 2  ;;  %v343_v10 = vrot.slane %v342_v3, 2 }
  0xeb   :  { %v334_v11 = vrot.slane %v333_v7, 2  ;;  %v352_v12 = vrot.slane %v351_v8, 2 }
  0xec   :  { %v326_v13 = vadd.f32 %v325_v9, %v324_v2  ;;  %v344_v14 = vadd.f32 %v343_v10, %v342_v3 }
  0xed   :  { %v335_v17 = vadd.f32 %v334_v11, %v333_v7  ;;  %v353_v18 = vadd.f32 %v352_v12, %v351_v8 }
  0xee   :  { %v327_v19 = vrot.slane %v326_v13, 1  ;;  %v345_v20 = vrot.slane %v344_v14, 1 }
  0xef   :  { %v336_v21 = vrot.slane %v335_v17, 1  ;;  %v354_v22 = vrot.slane %v353_v18, 1 }
  0xf0   :  { %v328_v24 = vadd.f32 %v327_v19, %v326_v13  ;;  %v346_v25 = vadd.f32 %v345_v20, %v344_v14 }
  0xf1   :  { %v337_v26 = vadd.f32 %v336_v21, %v335_v17  ;;  %v355_v27 = vadd.f32 %v354_v22, %v353_v18 }
  0xf3   :  { %v360_v28 = vcombine.low %v328_v24, %v337_v26  ;;  %v361_v29 = vcombine.low %v346_v25, %v355_v27 }
  0xf5   :  { %v368_v30 = vrot.slane %v360_v28, %v367_v23  ;;  %v375_v31 = vrot.slane %v361_v29, %v367_v23 }
  0xf7   :  { %v376_v32 = vcombine.low %v368_v30, %v375_v31 }
  0xf9   :  { %v383_v33 = vrot.slane %v376_v32, %v367_v23 }
  0xfb   :  { %389 = vst.msk [vmem:[%s578_s4] sm:$0xf] %vm387_vm1, %v383_v33 }

</bundles_post_ra>
